<compile_context>
chip_gen: v7x
topology: tpu7x:2x2x1
jax: 0.10.0
libtpu: 0.0.40
codegen_flags: <defaults>
</compile_context>

<pallas_src>
import numpy as np
import jax
import jax.numpy as jnp
from jax import lax
from jax.experimental import pallas as pl
from jax.experimental.pallas import tpu as pltpu


# ------------------------------ helpers ------------------------------------

def _round_up(x, m):
    return ((x + m - 1) // m) * m


def _stable_softplus(x):
    return jnp.maximum(x, 0.0) + jnp.log1p(jnp.exp(-jnp.abs(x)))


# ------------------------------ Pallas kernel ------------------------------

def _make_actor_kernel(discrete, action_size, a_pad, mean_scale, min_std,
                       raw_init_std):
    """Fused Linear -> ELU -> Linear -> sample kernel for one row tile.

    x_ref:     (Bt, Lp)        padded latent = cat(stoch, deterministic)
    w1_ref:    (Lp, Hp)        first linear weight (transposed, zero padded)
    b1_ref:    (1, Hp)
    w2_ref:    (Hp, Wc)        second linear weight; Wc = a_pad (discrete)
                               or 2*a_pad (continuous: [mean | std] halves)
    b2_ref:    (1, Wc)
    noise_ref: (Bt, a_pad)     gumbel (discrete) or standard normal (continuous)
    o_ref:     (Bt, a_pad)     action sample
    """
    def kernel(x_ref, w1_ref, b1_ref, w2_ref, b2_ref, noise_ref, o_ref):
        # layer 1 + ELU(alpha=1)
        h = jnp.dot(x_ref[...], w1_ref[...],
                    preferred_element_type=jnp.float32) + b1_ref[...]
        h = jnp.where(h > 0.0, h, jnp.exp(jnp.minimum(h, 0.0)) - 1.0)
        # layer 2
        y = jnp.dot(h, w2_ref[...],
                    preferred_element_type=jnp.float32) + b2_ref[...]

        if discrete:
            # OneHotCategorical(logits=y): Gumbel-max sample over valid columns.
            col = lax.broadcasted_iota(jnp.int32, y.shape, 1)
            valid = col < action_size
            pert = jnp.where(valid, y + noise_ref[...], jnp.float32(-1e30))
            best = jnp.max(pert, axis=-1, keepdims=True)
            o_ref[...] = jnp.where((pert >= best) & valid, 1.0, 0.0)
        else:
            mean = y[:, :a_pad]
            std_pre = y[:, a_pad:]
            mean = mean_scale * jnp.tanh(mean / mean_scale)
            std = _stable_softplus(std_pre + raw_init_std) + min_std
            # rsample of tanh-transformed Normal
            o_ref[...] = jnp.tanh(mean + std * noise_ref[...])

    return kernel


# ------------------------------ packing ------------------------------------

def init_linear(key, fan_in, fan_out):
    """torch nn.Linear default init: U(-1/sqrt(fan_in), 1/sqrt(fan_in))."""
    kw, kb = jax.random.split(key)
    bound = 1.0 / float(np.sqrt(fan_in))
    w = jax.random.uniform(kw, (fan_out, fan_in), jnp.float32, -bound, bound)
    b = jax.random.uniform(kb, (fan_out,), jnp.float32, -bound, bound)
    return np.asarray(w), np.asarray(b)


def pack_actor_params(w1, b1, w2, b2, latent_size, hidden_size, action_size,
                      discrete):
    """Pad + transpose weights to lane-dense (multiple-of-128) layouts."""
    lp = _round_up(latent_size, 128)
    hp = _round_up(hidden_size, 128)
    ap = _round_up(action_size, 128)

    w1p = np.zeros((lp, hp), np.float32)
    w1p[:latent_size, :hidden_size] = w1.T
    b1p = np.zeros((1, hp), np.float32)
    b1p[0, :hidden_size] = b1

    if discrete:
        wc = ap
        w2p = np.zeros((hp, wc), np.float32)
        w2p[:hidden_size, :action_size] = w2.T
        b2p = np.zeros((1, wc), np.float32)
        b2p[0, :action_size] = b2
    else:
        wc = 2 * ap
        w2p = np.zeros((hp, wc), np.float32)
        w2p[:hidden_size, :action_size] = w2[:action_size].T
        w2p[:hidden_size, ap:ap + action_size] = w2[action_size:].T
        b2p = np.zeros((1, wc), np.float32)
        b2p[0, :action_size] = b2[:action_size]
        b2p[0, ap:ap + action_size] = b2[action_size:]

    return dict(w1=jnp.asarray(w1p), b1=jnp.asarray(b1p),
                w2=jnp.asarray(w2p), b2=jnp.asarray(b2p),
                Lp=lp, Hp=hp, Ap=ap, Wc=wc,
                latent_size=latent_size, action_size=action_size,
                discrete=discrete)


# ------------------------------ forward ------------------------------------

def actor_forward(params, stoch_state, deterministic, noise, *,
                  mean_scale=5.0, min_std=1e-4, init_std=5.0, row_tile=256):
    """Returns the sampled action, shape (*batch, action_size)."""
    discrete = params["discrete"]
    action_size = params["action_size"]
    lp, hp, ap, wc = params["Lp"], params["Hp"], params["Ap"], params["Wc"]

    x = jnp.concatenate([stoch_state, deterministic], axis=-1).astype(jnp.float32)
    batch_shape = x.shape[:-1]
    x = x.reshape(-1, x.shape[-1])
    noise = jnp.asarray(noise, jnp.float32).reshape(-1, action_size)
    n, din = x.shape

    bt = min(row_tile, _round_up(n, 8))
    n_rows = _round_up(_round_up(n, 8), bt)

    xp = jnp.zeros((n_rows, lp), jnp.float32).at[:n, :din].set(x)
    noise_p = jnp.zeros((n_rows, ap), jnp.float32).at[:n, :action_size].set(noise)

    raw_init_std = float(np.log(np.exp(init_std) - 1.0))
    kernel = _make_actor_kernel(discrete, action_size, ap,
                                float(mean_scale), float(min_std), raw_init_std)

    out = pl.pallas_call(
        kernel,
        out_shape=jax.ShapeDtypeStruct((n_rows, ap), jnp.float32),
        grid=(n_rows // bt,),
        in_specs=[
            pl.BlockSpec((bt, lp), lambda i: (i, 0)),
            pl.BlockSpec((lp, hp), lambda i: (0, 0)),
            pl.BlockSpec((1, hp), lambda i: (0, 0)),
            pl.BlockSpec((hp, wc), lambda i: (0, 0)),
            pl.BlockSpec((1, wc), lambda i: (0, 0)),
            pl.BlockSpec((bt, ap), lambda i: (i, 0)),
        ],
        out_specs=pl.BlockSpec((bt, ap), lambda i: (i, 0)),
        compiler_params=pltpu.CompilerParams(
            dimension_semantics=("parallel",)),
    )(xp, params["w1"], params["b1"], params["w2"], params["b2"], noise_p)

    out = out[:n, :action_size]
    return out.reshape(*batch_shape, action_size)


# --------------------------- numpy reference --------------------------------

def ref_forward(w1, b1, w2, b2, stoch, det, noise, *, discrete, action_size,
                mean_scale=5.0, min_std=1e-4, init_std=5.0):
    x = np.concatenate([np.asarray(stoch), np.asarray(det)],
                       axis=-1).astype(np.float32)
    h = x @ w1.T + b1
    h = np.where(h > 0.0, h, np.exp(np.minimum(h, 0.0)) - 1.0)      # ELU
    y = h @ w2.T + b2
    noise = np.asarray(noise, np.float32)
    if discrete:
        pert = y + noise
        idx = np.argmax(pert, axis=-1)
        onehot = np.zeros_like(y)
        onehot[np.arange(y.shape[0]), idx] = 1.0
        return onehot
    else:
        mean, std_pre = y[:, :action_size], y[:, action_size:]
        mean = mean_scale * np.tanh(mean / mean_scale)
        raw = np.log(np.exp(init_std) - 1.0)
        t = std_pre + raw
        std = np.maximum(t, 0.0) + np.log1p(np.exp(-np.abs(t))) + min_std
        return np.tanh(mean + std * noise)


# --------------------------------- main --------------------------------------

if __name__ == "__main__":
    key = jax.random.PRNGKey(0)
    stoch_size, det_size = 8, 24
    latent_size = stoch_size + det_size          # 32
    hidden_size = 32
    action_size = 6
    batch = 2

    k1, k2, kx1, kx2, kn1, kn2 = jax.random.split(key, 6)
    stoch = jax.random.normal(kx1, (batch, stoch_size), jnp.float32)
    det = jax.random.normal(kx2, (batch, det_size), jnp.float32)

    # ----- discrete actor (module default) -----
    kd1, kd2 = jax.random.split(k1)
    w1, b1 = init_linear(kd1, latent_size, hidden_size)
    w2, b2 = init_linear(kd2, hidden_size, action_size)
    params_d = pack_actor_params(w1, b1, w2, b2, latent_size, hidden_size,
                                 action_size, discrete=True)
    gumbel = jax.random.gumbel(kn1, (batch, action_size), jnp.float32)

    act_d = actor_forward(params_d, stoch, det, gumbel)
    act_d = jax.block_until_ready(act_d)
    assert act_d.shape == (batch, action_size), act_d.shape
    ref_d = ref_forward(w1, b1, w2, b2, stoch, det, np.asarray(gumbel),
                        discrete=True, action_size=action_size)
    np.testing.assert_allclose(np.asarray(act_d), ref_d, rtol=0, atol=1e-6)
    np.testing.assert_allclose(np.asarray(act_d).sum(-1),
                               np.ones(batch), rtol=0, atol=1e-6)

    # ----- continuous (tanh-Normal) actor -----
    kc1, kc2 = jax.random.split(k2)
    w1c, b1c = init_linear(kc1, latent_size, hidden_size)
    w2c, b2c = init_linear(kc2, hidden_size, 2 * action_size)
    params_c = pack_actor_params(w1c, b1c, w2c, b2c, latent_size, hidden_size,
                                 action_size, discrete=False)
    eps = jax.random.normal(kn2, (batch, action_size), jnp.float32)

    act_c = actor_forward(params_c, stoch, det, eps)
    act_c = jax.block_until_ready(act_c)
    assert act_c.shape == (batch, action_size), act_c.shape
    ref_c = ref_forward(w1c, b1c, w2c, b2c, stoch, det, np.asarray(eps),
                        discrete=False, action_size=action_size)
    np.testing.assert_allclose(np.asarray(act_c), ref_c, rtol=2e-3, atol=2e-3)

    print("KERNEL_OK")
</pallas_src>

<mosaic_0001>
module attributes {stable_mosaic.version = 11 : i64} {
  func.func @kernel(%arg0: i32, %arg1: memref<8x128xf32, #tpu.memory_space<vmem>>, %arg2: memref<128x128xf32, #tpu.memory_space<vmem>>, %arg3: memref<1x128xf32, #tpu.memory_space<vmem>>, %arg4: memref<128x128xf32, #tpu.memory_space<vmem>>, %arg5: memref<1x128xf32, #tpu.memory_space<vmem>>, %arg6: memref<8x128xf32, #tpu.memory_space<vmem>>, %arg7: memref<8x128xf32, #tpu.memory_space<vmem>>) attributes {dimension_semantics = [#tpu.dimension_semantics<parallel>], iteration_bounds = array<i64: 1>, scalar_prefetch = 0 : i64, scratch_operands = 0 : i64, tpu.core_type = #tpu.core_type<tc>, window_params = [{transform_indices = @transform_0, window_bounds = array<i64: 8, 128>}, {pipeline_mode = #tpu.pipeline_mode<synchronous>, transform_indices = @transform_1, window_bounds = array<i64: 128, 128>}, {pipeline_mode = #tpu.pipeline_mode<synchronous>, transform_indices = @transform_2, window_bounds = array<i64: 1, 128>}, {pipeline_mode = #tpu.pipeline_mode<synchronous>, transform_indices = @transform_3, window_bounds = array<i64: 128, 128>}, {pipeline_mode = #tpu.pipeline_mode<synchronous>, transform_indices = @transform_4, window_bounds = array<i64: 1, 128>}, {transform_indices = @transform_5, window_bounds = array<i64: 8, 128>}, {transform_indices = @transform_6, window_bounds = array<i64: 8, 128>}]} {
    %c0 = arith.constant 0 : index
    %c0_0 = arith.constant 0 : index
    %0 = vector.load %arg1[%c0, %c0_0] : memref<8x128xf32, #tpu.memory_space<vmem>>, vector<8x128xf32>
    %c0_1 = arith.constant 0 : index
    %c0_2 = arith.constant 0 : index
    %1 = vector.load %arg2[%c0_1, %c0_2] : memref<128x128xf32, #tpu.memory_space<vmem>>, vector<128x128xf32>
    %cst = arith.constant dense<0.000000e+00> : vector<8x128xf32>
    %2 = tpu.matmul %0, %1, %cst {dimension_numbers = #tpu.dot_dimension_numbers<[1], [0], [0], [1], [0, 0, 1, 1], [], []>} : vector<8x128xf32>, vector<128x128xf32>, vector<8x128xf32> -> vector<8x128xf32>
    %c0_3 = arith.constant 0 : index
    %c0_4 = arith.constant 0 : index
    %3 = vector.load %arg3[%c0_3, %c0_4] : memref<1x128xf32, #tpu.memory_space<vmem>>, vector<1x128xf32>
    %4 = vector.broadcast %3 : vector<1x128xf32> to vector<8x128xf32>
    %5 = arith.addf %2, %4 : vector<8x128xf32>
    %cst_5 = arith.constant 0.000000e+00 : f32
    %6 = vector.broadcast %cst_5 : f32 to vector<8x128xf32>
    %7 = arith.cmpf ogt, %5, %6 : vector<8x128xf32>
    %cst_6 = arith.constant 0.000000e+00 : f32
    %8 = vector.broadcast %cst_6 : f32 to vector<8x128xf32>
    %9 = arith.minimumf %5, %8 : vector<8x128xf32>
    %10 = math.exp %9 : vector<8x128xf32>
    %cst_7 = arith.constant 1.000000e+00 : f32
    %11 = vector.broadcast %cst_7 : f32 to vector<8x128xf32>
    %12 = arith.subf %10, %11 : vector<8x128xf32>
    %13 = arith.select %7, %5, %12 : vector<8x128xi1>, vector<8x128xf32>
    %c0_8 = arith.constant 0 : index
    %c0_9 = arith.constant 0 : index
    %14 = vector.load %arg4[%c0_8, %c0_9] : memref<128x128xf32, #tpu.memory_space<vmem>>, vector<128x128xf32>
    %cst_10 = arith.constant dense<0.000000e+00> : vector<8x128xf32>
    %15 = tpu.matmul %13, %14, %cst_10 {dimension_numbers = #tpu.dot_dimension_numbers<[1], [0], [0], [1], [0, 0, 1, 1], [], []>} : vector<8x128xf32>, vector<128x128xf32>, vector<8x128xf32> -> vector<8x128xf32>
    %c0_11 = arith.constant 0 : index
    %c0_12 = arith.constant 0 : index
    %16 = vector.load %arg5[%c0_11, %c0_12] : memref<1x128xf32, #tpu.memory_space<vmem>>, vector<1x128xf32>
    %17 = vector.broadcast %16 : vector<1x128xf32> to vector<8x128xf32>
    %18 = arith.addf %15, %17 : vector<8x128xf32>
    %19 = tpu.iota {dimensions = array<i32: 1>} : vector<8x128xi32>
    %c6_i32 = arith.constant 6 : i32
    %20 = vector.broadcast %c6_i32 : i32 to vector<8x128xi32>
    %21 = arith.cmpi slt, %19, %20 : vector<8x128xi32>
    %c0_13 = arith.constant 0 : index
    %c0_14 = arith.constant 0 : index
    %22 = vector.load %arg6[%c0_13, %c0_14] : memref<8x128xf32, #tpu.memory_space<vmem>>, vector<8x128xf32>
    %23 = arith.addf %18, %22 : vector<8x128xf32>
    %cst_15 = arith.constant -1.000000e+30 : f32
    %24 = vector.broadcast %cst_15 : f32 to vector<8x128xf32>
    %25 = arith.select %21, %23, %24 : vector<8x128xi1>, vector<8x128xf32>
    %cst_16 = arith.constant dense<0xFF800000> : vector<8xf32>
    %26 = vector.multi_reduction <maximumf>, %25, %cst_16 [1] : vector<8x128xf32> to vector<8xf32>
    %27 = vector.shape_cast %26 : vector<8xf32> to vector<8x1xf32>
    %28 = vector.broadcast %27 : vector<8x1xf32> to vector<8x128xf32>
    %29 = arith.cmpf oge, %25, %28 : vector<8x128xf32>
    %30 = arith.andi %29, %21 : vector<8x128xi1>
    %cst_17 = arith.constant 1.000000e+00 : f32
    %cst_18 = arith.constant 0.000000e+00 : f32
    %31 = vector.broadcast %cst_17 : f32 to vector<8x128xf32>
    %32 = vector.broadcast %cst_18 : f32 to vector<8x128xf32>
    %33 = arith.select %30, %31, %32 : vector<8x128xi1>, vector<8x128xf32>
    %c0_19 = arith.constant 0 : index
    %c0_20 = arith.constant 0 : index
    %34 = vector.load %arg7[%c0_19, %c0_20] : memref<8x128xf32, #tpu.memory_space<vmem>>, vector<8x128xf32>
    tpu.vector_store %arg7[%c0_19, %c0_20], %33 {strides = array<i32>} : memref<8x128xf32, #tpu.memory_space<vmem>>, vector<8x128xf32>,
    return
  }
  func.func @transform_0(%arg0: i32) -> (i32, i32) {
    %c0_i32 = arith.constant 0 : i32
    %c0_i32_0 = arith.constant 0 : i32
    return %arg0, %c0_i32 : i32, i32
  }
  func.func @transform_1(%arg0: i32) -> (i32, i32) {
    %c0_i32 = arith.constant 0 : i32
    %c0_i32_0 = arith.constant 0 : i32
    %c0_i32_1 = arith.constant 0 : i32
    return %c0_i32, %c0_i32_0 : i32, i32
  }
  func.func @transform_2(%arg0: i32) -> (i32, i32) {
    %c0_i32 = arith.constant 0 : i32
    %c0_i32_0 = arith.constant 0 : i32
    %c0_i32_1 = arith.constant 0 : i32
    return %c0_i32, %c0_i32_0 : i32, i32
  }
  func.func @transform_3(%arg0: i32) -> (i32, i32) {
    %c0_i32 = arith.constant 0 : i32
    %c0_i32_0 = arith.constant 0 : i32
    %c0_i32_1 = arith.constant 0 : i32
    return %c0_i32, %c0_i32_0 : i32, i32
  }
  func.func @transform_4(%arg0: i32) -> (i32, i32) {
    %c0_i32 = arith.constant 0 : i32
    %c0_i32_0 = arith.constant 0 : i32
    %c0_i32_1 = arith.constant 0 : i32
    return %c0_i32, %c0_i32_0 : i32, i32
  }
  func.func @transform_5(%arg0: i32) -> (i32, i32) {
    %c0_i32 = arith.constant 0 : i32
    %c0_i32_0 = arith.constant 0 : i32
    return %arg0, %c0_i32 : i32, i32
  }
  func.func @transform_6(%arg0: i32) -> (i32, i32) {
    %c0_i32 = arith.constant 0 : i32
    %c0_i32_0 = arith.constant 0 : i32
    return %arg0, %c0_i32 : i32, i32
  }
}

</mosaic_0001>

<bundles_post_ra>
// kernel: tpu_custom_call.1
= control target key start
LH: loop header
LB: loop body
LE: loop exit
PB: predicated region body
PF: predicated region fallthrough
CT: control target
= control target key end

     0   :  { %11 = vsyncpa [#allocation3], 0  ;;  %s670_s0 = inlined_call_operand.hbm [shape: f32[8,128], index: 0, kind: input, shape index: {}]   ;;  %s671_s1 = inlined_call_operand.hbm [shape: f32[128,128], index: 1, kind: input, shape index: {}]   ;;  %s672_s2 = inlined_call_operand.vmem [shape: f32[1,128], index: 2, kind: input, shape index: {}]   ;;  %s673_s3 = inlined_call_operand.hbm [shape: f32[128,128], index: 3, kind: input, shape index: {}]   ;;  %s674_s4 = inlined_call_operand.vmem [shape: f32[1,128], index: 4, kind: input, shape index: {}]   ;;  %s675_s5 = inlined_call_operand.vmem [shape: f32[8,128], index: 5, kind: input, shape index: {}]   ;;  %s676_s6 = inlined_call_operand.hbm [shape: f32[8,128], index: 6, kind: output, shape index: {}]  }
   0x1   :  { %12 = vsyncpa [#allocation6], 0 }
   0x2   :  { %13 = vsyncpa [#allocation4], 0  ;;  %s544_s21 = smov [#allocation5]   ;;  %s450_s25 = scalar_lea.hbm %s671_s1, 2048 }
   0x3   :  { %s29_s22 = sshll.u32 %s544_s21, 4  ;;  %p451_p0 = scmp.ne.s32.totalorder %s671_s1, %s450_s25  ;;  %s30_s22 = int_to_ptr.vmem [resolvable:$true] %s29_s22 }
   0x4   :  { %p454_p1 = scmp.lt.u32.totalorder %s450_s25, %s671_s1 }
   0x6   :  { %p456_p2 = pnand %p454_p1, %p451_p0 }
   0x8   :  { %459 = shalt.err (!%p456_p2)
}
   0x9   :  { %s460_s30 = scalar_lea.vmem %s30_s22, 2048  ;;  %p465_p4 = scmp.lt.s32.totalorder %s30_s22, %s30_s22 }
   0xa   :  { %p461_p3 = scmp.ne.s32.totalorder %s30_s22, %s460_s30  ;;  %p466_p5 = scmp.lt.s32.totalorder %s460_s30, %s460_s30 }
   0xc   :  { %p467_p6 = por %p466_p5, %p465_p4 }
   0xe   :  { %p468_p7 = pnand %p467_p6, %p461_p3 }
  0x10   :  { %471 = shalt.err (!%p468_p7)
}
  0x11   :  { %s545_s7 = smov 128   ;;  %s546_s8 = smov 8  }
  0x12   :  { %35 = dma.hbm_to_vmem [thread:$0]  %s671_s1, 2048, %s30_s22, [#allocation6], %s545_s7, %s545_s7, %s546_s8  }
  0x13   :  { %s547_s11 = smov [#allocation2]   ;;  %s548_s13 = smov [#allocation7]  }
  0x14   :  { %s20_s12 = sshll.u32 %s547_s11, 4  ;;  %s43_s14 = sshll.u32 %s548_s13, 4  ;;  %s21_s12 = int_to_ptr.vmem [resolvable:$true] %s20_s12  ;;  %s44_s14 = int_to_ptr.vmem [resolvable:$true] %s43_s14 }
  0x15   :  { %s472_s17 = scalar_lea.hbm %s670_s0, 128 }
  0x16   :  { %p473_p8 = scmp.ne.s32.totalorder %s670_s0, %s472_s17  ;;  %p476_p9 = scmp.lt.u32.totalorder %s472_s17, %s670_s0 }
  0x18   :  { %p478_p10 = pnand %p476_p9, %p473_p8 }
  0x1a   :  { %481 = shalt.err (!%p478_p10)
}
  0x1b   :  { %s482_s1 = scalar_lea.vmem %s21_s12, 128  ;;  %p487_p12 = scmp.lt.s32.totalorder %s21_s12, %s21_s12 }
  0x1c   :  { %p483_p11 = scmp.ne.s32.totalorder %s21_s12, %s482_s1  ;;  %p488_p13 = scmp.lt.s32.totalorder %s482_s1, %s482_s1 }
  0x1e   :  { %p489_p0 = por %p488_p13, %p487_p12 }
  0x20   :  { %p490_p1 = pnand %p489_p0, %p483_p11 }
  0x22   :  { %493 = shalt.err (!%p490_p1)
}
  0x23   :  { %23 = dma.hbm_to_vmem [thread:$0]  %s670_s0, 128, %s21_s12, [#allocation3]  }
  0x24   :  { %s494_s26 = scalar_lea.hbm %s673_s3, 2048 }
  0x25   :  { %p495_p2 = scmp.ne.s32.totalorder %s673_s3, %s494_s26  ;;  %p498_p3 = scmp.lt.u32.totalorder %s494_s26, %s673_s3 }
  0x27   :  { %p500_p4 = pnand %p498_p3, %p495_p2 }
  0x29   :  { %503 = shalt.err (!%p500_p4)
}
  0x2a   :  { %s504_s9 = scalar_lea.vmem %s44_s14, 2048  ;;  %p509_p6 = scmp.lt.s32.totalorder %s44_s14, %s44_s14 }
  0x2b   :  { %p505_p5 = scmp.ne.s32.totalorder %s44_s14, %s504_s9  ;;  %p510_p7 = scmp.lt.s32.totalorder %s504_s9, %s504_s9 }
  0x2d   :  { %p511_p8 = por %p510_p7, %p509_p6 }
  0x2f   :  { %p512_p9 = pnand %p511_p8, %p505_p5 }
  0x31   :  { %515 = shalt.err (!%p512_p9)
}
  0x32   :  { %49 = dma.hbm_to_vmem [thread:$0]  %s673_s3, 2048, %s44_s14, [#allocation6], %s545_s7, %s545_s7, %s546_s8  }
  0x33   :  { %538 = dma.done.wait [#allocation3], 128  }
  0x34   :  { %539 = vsyncadd [#allocation3], 4294967168 }
  0x35   :  { %540 = dma.done.wait [#allocation6], 4096  }
  0x36   :  { %541 = vsyncadd [#allocation6], 4294963200  ;;  %v549_v0 = vmov 0.0|0.0   ;;  %vm550_vm0 = vmmov 0   ;;  %v551_v1 = vmov 0.0   ;;  %v64_v2 = vld [vmem:[#allocation5] sm:$0xff]  ;;  %v256_v60 = vlaneseq }
  0x37   :  { %391 = vmatprep.subr.bf16.mxu0 %v549_v0  ;;  %353 = vmatprep.mubr.msk.f32.mxu0 %vm550_vm0, %v551_v1  ;;  %v65_v3 = vld [vmem:[#allocation5 + $0x8] sm:$0xff]  ;;  %v66_v4 = vld [vmem:[#allocation5 + $0x10] sm:$0xff]  ;;  %v67_v6 = vld [vmem:[#allocation5 + $0x18] sm:$0xff]  ;;  %s552_s13 = smov [#allocation8]  }
  0x38   :  { %415 = vmatprep.subr.bf16.mxu1 %v549_v0  ;;  %388 = vmatprep.mubr.msk.f32.mxu1 %vm550_vm0, %v551_v1  ;;  %v392_v5 = vpack.c.bf16 %v65_v3, %v64_v2  ;;  %v395_v7 = vpack.c.bf16 %v67_v6, %v66_v4  ;;  %v68_v8 = vld [vmem:[#allocation5 + $0x20] sm:$0xff]  ;;  %v69_v9 = vld [vmem:[#allocation5 + $0x28] sm:$0xff]  ;;  %v165_v12 = vld [vmem:[#allocation7 + $0x10] sm:$0xff]  ;;  %v257_v62 = vand.u32 127, %v256_v60  ;;  %s274_s14 = sshll.u32 %s552_s13, 4  ;;  %s275_s14 = int_to_ptr.vmem [resolvable:$true] %s274_s14 }
  0x39   :  { %v163_v10 = vld [vmem:[#allocation7] sm:$0xff]  ;;  %v164_v11 = vld [vmem:[#allocation7 + $0x8] sm:$0xff]  ;;  %v166_v13 = vld [vmem:[#allocation7 + $0x18] sm:$0xff]  ;;  %v398_v14 = vpack.c.bf16 %v69_v9, %v68_v8  ;;  %p521_p11 = scmp.lt.s32.totalorder %s275_s14, %s275_s14 }
  0x3a   :  { %393 = vmatpush3.bf16.msra.mxu0 %v392_v5  ;;  %v416_v15 = vpack.c.bf16 %v164_v11, %v163_v10  ;;  %v70_v16 = vld [vmem:[#allocation5 + $0x30] sm:$0xff]  ;;  %v71_v17 = vld [vmem:[#allocation5 + $0x38] sm:$0xff]  ;;  %v419_v18 = vpack.c.bf16 %v166_v13, %v165_v12  ;;  %v167_v19 = vld [vmem:[#allocation7 + $0x20] sm:$0xff]  ;;  %vm258_vm2 = vcmp.lt.s32.totalorder %v257_v62, 6 }
  0x3b   :  { %394 = vmatprep.subr.bf16.mxu0 %v549_v0  ;;  %v168_v20 = vld [vmem:[#allocation7 + $0x28] sm:$0xff]  ;;  %v401_v21 = vpack.c.bf16 %v71_v17, %v70_v16  ;;  %v72_v22 = vld [vmem:[#allocation5 + $0x40] sm:$0xff]  ;;  %v74_v26 = vld [vmem:[#allocation5 + $0x50] sm:$0xff] }
  0x3c   :  { %417 = vmatpush3.bf16.msra.mxu1 %v416_v15  ;;  %v73_v23 = vld [vmem:[#allocation5 + $0x48] sm:$0xff]  ;;  %v422_v24 = vpack.c.bf16 %v168_v20, %v167_v19  ;;  %v75_v27 = vld [vmem:[#allocation5 + $0x58] sm:$0xff]  ;;  %v76_v29 = vld [vmem:[#allocation5 + $0x60] sm:$0xff] }
  0x3d   :  { %418 = vmatprep.subr.bf16.mxu1 %v549_v0  ;;  %v404_v25 = vpack.c.bf16 %v73_v23, %v72_v22  ;;  %v407_v28 = vpack.c.bf16 %v75_v27, %v74_v26  ;;  %v77_v30 = vld [vmem:[#allocation5 + $0x68] sm:$0xff]  ;;  %v78_v32 = vld [vmem:[#allocation5 + $0x70] sm:$0xff]  ;;  %v79_v33 = vld [vmem:[#allocation5 + $0x78] sm:$0xff] }
  0x3e   :  { %396 = vmatpush3.bf16.msra.mxu0 %v395_v7  ;;  %v410_v31 = vpack.c.bf16 %v77_v30, %v76_v29  ;;  %v413_v34 = vpack.c.bf16 %v79_v33, %v78_v32  ;;  %v63_v35 = vld [vmem:[#allocation2] sm:$0xff]  ;;  %v169_v36 = vld [vmem:[#allocation7 + $0x30] sm:$0xff]  ;;  %v171_v39 = vld [vmem:[#allocation7 + $0x40] sm:$0xff] }
  0x3f   :  { %397 = vmatprep.subr.bf16.mxu0 %v549_v0  ;;  %v170_v37 = vld [vmem:[#allocation7 + $0x38] sm:$0xff]  ;;  %v172_v40 = vld [vmem:[#allocation7 + $0x48] sm:$0xff]  ;;  %v173_v42 = vld [vmem:[#allocation7 + $0x50] sm:$0xff] }
  0x40   :  { %420 = vmatpush3.bf16.msra.mxu1 %v419_v18  ;;  %v425_v38 = vpack.c.bf16 %v170_v37, %v169_v36  ;;  %v428_v41 = vpack.c.bf16 %v172_v40, %v171_v39  ;;  %v174_v43 = vld [vmem:[#allocation7 + $0x58] sm:$0xff]  ;;  %v175_v44 = vld [vmem:[#allocation7 + $0x60] sm:$0xff]  ;;  %v176_v46 = vld [vmem:[#allocation7 + $0x68] sm:$0xff] }
  0x41   :  { %421 = vmatprep.subr.bf16.mxu1 %v549_v0  ;;  %v431_v45 = vpack.c.bf16 %v174_v43, %v173_v42  ;;  %v434_v47 = vpack.c.bf16 %v176_v46, %v175_v44  ;;  %v177_v48 = vld [vmem:[#allocation7 + $0x70] sm:$0xff]  ;;  %v178_v49 = vld [vmem:[#allocation7 + $0x78] sm:$0xff] }
  0x42   :  { %399 = vmatpush3.bf16.msra.mxu0 %v398_v14  ;;  %v437_v50 = vpack.c.bf16 %v178_v49, %v177_v48  ;;  %v284_v51 = vld [vmem:[%s672_s2] ss:$0 sm:$0xff] }
  0x43   :  { %400 = vmatprep.subr.bf16.mxu0 %v549_v0  ;;  %v286_v61 = vld [vmem:[%s674_s4] ss:$0 sm:$0xff]  ;;  %s516_s4 = scalar_lea.vmem %s275_s14, 128 }
  0x44   :  { %423 = vmatpush3.bf16.msra.mxu1 %v422_v24  ;;  %p517_p10 = scmp.ne.s32.totalorder %s275_s14, %s516_s4  ;;  %p522_p12 = scmp.lt.s32.totalorder %s516_s4, %s516_s4 }
  0x45   :  { %424 = vmatprep.subr.bf16.mxu1 %v549_v0 }
  0x46   :  { %402 = vmatpush3.bf16.msra.mxu0 %v401_v21  ;;  %p523_p13 = por %p522_p12, %p521_p11 }
  0x47   :  { %403 = vmatprep.subr.bf16.mxu0 %v549_v0 }
  0x48   :  { %426 = vmatpush3.bf16.msra.mxu1 %v425_v38  ;;  %p524_p0 = pnand %p523_p13, %p517_p10 }
  0x49   :  { %427 = vmatprep.subr.bf16.mxu1 %v549_v0 }
  0x4a   :  { %405 = vmatpush3.bf16.msra.mxu0 %v404_v25 }
  0x4b   :  { %406 = vmatprep.subr.bf16.mxu0 %v549_v0 }
  0x4c   :  { %429 = vmatpush3.bf16.msra.mxu1 %v428_v41 }
  0x4d   :  { %430 = vmatprep.subr.bf16.mxu1 %v549_v0 }
  0x4e   :  { %408 = vmatpush3.bf16.msra.mxu0 %v407_v28 }
  0x4f   :  { %409 = vmatprep.subr.bf16.mxu0 %v549_v0 }
  0x50   :  { %432 = vmatpush3.bf16.msra.mxu1 %v431_v45 }
  0x51   :  { %433 = vmatprep.subr.bf16.mxu1 %v549_v0 }
  0x52   :  { %411 = vmatpush3.bf16.msra.mxu0 %v410_v31 }
  0x53   :  { %412 = vmatprep.subr.bf16.mxu0 %v549_v0 }
  0x54   :  { %435 = vmatpush3.bf16.msra.mxu1 %v434_v47 }
  0x55   :  { %436 = vmatprep.subr.bf16.mxu1 %v549_v0  ;;  %v259_v0 = vld [vmem:[%s675_s5] sm:$0xff] }
  0x56   :  { %414 = vmatpush3.bf16.msra.mxu0 %v413_v34 }
  0x58   :  { %438 = vmatpush3.bf16.msra.mxu1 %v437_v50 }
  0x59   :  { %354 = vmatmul.mubr.f32.vlgmr.msra.gmra.mrb[0].mxu0 %v63_v35 }
 0x12c   :  { %v153_v52 = vpop.f32.mrb[0].mxu0 }
 0x12d   :  { %v154_v53 = vadd.f32 %v284_v51, %v153_v52  ;;  %v355_v54 = vpop.f32.mrb[1].mxu0 }
 0x12f   :  { %v158_v55 = vmin.f32 %v154_v53, 0.0  ;;  %vm157_vm1 = vcmp.gt.f32.partialorder %v154_v53, 0.0 }
 0x131   :  { %v159_v56 = vmul.f32 1.442695, %v158_v55 }
 0x133   :  { %448 = vpow2.f32 %v159_v56 }
 0x13d   :  { %v449_v57 = vpop.eup %448 }
 0x13e   :  { %v285_v58 = vadd.f32 -1.0, %v449_v57 }
 0x140   :  { %v162_v59 = vsel %vm157_vm1, %v154_v53, %v285_v58 }
 0x141   :  { %389 = vmatmul.mubr.f32.vlgmr.msra.gmra.mrb[0].mxu1 %v162_v59 }
 0x214   :  { %v252_v63 = vpop.f32.mrb[0].mxu1 }
 0x215   :  { %v253_v2 = vadd.f32 %v286_v61, %v252_v63  ;;  %v390_v3 = vpop.f32.mrb[1].mxu1 }
 0x217   :  { %v260_v4 = vadd.f32 %v259_v0, %v253_v2 }
 0x219   :  { %v261_v5 = vsel %vm258_vm2, %v260_v4, -1e+30 }
 0x21a   :  { %262 = vmax.xlane.f32.xlu0 %v261_v5 }
 0x2a7   :  { %v263_v6 = vpop.xlane.xlu0 %262 }
 0x2a8   :  { %vm264_vm3 = vcmp.ge.f32.partialorder %v261_v5, %v263_v6 }
 0x2a9   :  { %vm265_vm4 = vmand %vm264_vm3, %vm258_vm2 }
 0x2aa   :  { %v266_v7 = vsel %vm265_vm4, 1.0, %v551_v1 }
 0x2ab   :  { %267 = vst [vmem:[#allocation8] sm:$0xff] %v266_v7 }
 0x2ac   :  { %527 = shalt.err (!%p524_p0)
}
 0x2ad   :  { %s528_s16 = scalar_lea.hbm %s676_s6, 128 }
 0x2ae   :  { %p529_p1 = scmp.ne.s32.totalorder %s676_s6, %s528_s16  ;;  %p532_p2 = scmp.lt.u32.totalorder %s528_s16, %s676_s6 }
 0x2b0   :  { %p534_p3 = pnand %p532_p2, %p529_p1 }
 0x2b2   :  { %537 = shalt.err (!%p534_p3)
}
 0x2b3   :  { %277 = dma.vmem_to_hbm [thread:$0]  %s275_s14, 128, %s676_s6, [#allocation4]  }
 0x2b4   :  { %542 = dma.done.wait [#allocation4], 128  }
 0x2b5   :  { %543 = vsyncadd [#allocation4], 4294967168 }
 0x2b6   :  { %281 = vsyncpa [#allocation3], 1 }
 0x2b7   :  { %282 = vsyncpa [#allocation6], 1 }
 0x2b8   :  { %283 = vsyncpa [#allocation4], 1 }

</bundles_post_ra>
